<compile_context>
chip_gen: v5e
topology: v5e:2x2
jax: 0.10.0
libtpu: 0.0.40
codegen_flags: <defaults>
</compile_context>

<pallas_src>
import jax
import jax.numpy as jnp
from jax.experimental import pallas as pl
from jax.experimental.pallas import tpu as pltpu

HIDDEN = 40
LANE = 128


def _round_up(n, m):
    return ((n + m - 1) // m) * m


def _mlp_kernel(x_ref, w1_ref, b1_ref, w2_ref, b2_ref, w3_ref, b3_ref, o_ref):
    # x tile: (TB, IN) in caller dtype; cast to bf16 in-kernel for the MXU.
    # Weights are bf16 (resident); biases f32; accumulation in f32.
    x = x_ref[...].astype(jnp.bfloat16)
    h1 = jnp.dot(x, w1_ref[...], preferred_element_type=jnp.float32) + b1_ref[...]
    h1 = jnp.maximum(h1, 0.0)                                   # f32 ReLU (VPU)
    h2 = jnp.dot(h1.astype(jnp.bfloat16), w2_ref[...],
                 preferred_element_type=jnp.float32) + b2_ref[...]
    h2 = jnp.maximum(h2, 0.0)
    out = jnp.dot(h2.astype(jnp.bfloat16), w3_ref[...],
                  preferred_element_type=jnp.float32) + b3_ref[...]
    o_ref[...] = out                                            # only out_n real cols


def mlp_forward(x, params, *, block_batch=1024):
    """params = (w1, b1, w2, b2, w3, b3) with shapes
       (in,40), (1,40), (40,40), (1,40), (40,out), (1,out)."""
    w1, b1, w2, b2, w3, b3 = params
    batch, in_n = x.shape
    hid = w1.shape[1]
    out_n = w3.shape[1]

    hid_p = _round_up(hid, LANE)     # 40 -> 128 (lane-dense hidden)

    # Zero-pad the hidden feature dim (numerically identical: padded lanes stay 0
    # through matmul + ReLU) and cast MXU operands to bf16.  Output dim is NOT
    # padded, so HBM writeback is exactly (batch, out_n) f32.
    w1p = jnp.pad(w1, ((0, 0), (0, hid_p - hid))).astype(jnp.bfloat16)
    b1p = jnp.pad(b1, ((0, 0), (0, hid_p - hid))).astype(jnp.float32)
    w2p = jnp.pad(w2, ((0, hid_p - hid), (0, hid_p - hid))).astype(jnp.bfloat16)
    b2p = jnp.pad(b2, ((0, 0), (0, hid_p - hid))).astype(jnp.float32)
    w3p = jnp.pad(w3, ((0, hid_p - hid), (0, 0))).astype(jnp.bfloat16)
    b3p = b3.astype(jnp.float32)

    # Batch tile: 16-aligned (bf16 sublane packing), capped so the grid has at
    # least 2 steps whenever batch > 16 (lets the "parallel" batch axis shard
    # across both v7x TensorCores), and never larger than the 8-aligned batch.
    tb = _round_up(block_batch, 16)
    tb = min(tb, max(16, _round_up(pl.cdiv(batch, 2), 16)))
    tb = min(tb, _round_up(batch, 8))
    grid = (pl.cdiv(batch, tb),)     # ragged last tile handled by Pallas

    def resident(a):
        # Full-array block, same block every grid step -> stays resident in VMEM.
        return pl.BlockSpec(a.shape, lambda i, _nd=a.ndim: (0,) * _nd)

    out = pl.pallas_call(
        _mlp_kernel,
        out_shape=jax.ShapeDtypeStruct((batch, out_n), jnp.float32),
        grid=grid,
        in_specs=[
            pl.BlockSpec((tb, in_n), lambda i: (i, 0)),   # streamed x tile
            resident(w1p), resident(b1p),
            resident(w2p), resident(b2p),
            resident(w3p), resident(b3p),
        ],
        out_specs=pl.BlockSpec((tb, out_n), lambda i: (i, 0)),
        compiler_params=pltpu.CompilerParams(
            dimension_semantics=("parallel",),            # shard batch across TCs
        ),
    )(x, w1p, b1p, w2p, b2p, w3p, b3p)

    return out


def init_params(key, input_n, output_n):
    """Deterministic init mirroring reset_parameters():
       xavier_normal_ on weights, uniform_(0,1) on biases."""
    ks = jax.random.split(key, 6)

    def xavier_normal(k, fan_in, fan_out):
        std = (2.0 / (fan_in + fan_out)) ** 0.5
        # stored as (fan_in, fan_out) == transpose of PyTorch (out, in)
        return std * jax.random.normal(k, (fan_in, fan_out), dtype=jnp.float32)

    w1 = xavier_normal(ks[0], input_n, HIDDEN)
    b1 = jax.random.uniform(ks[1], (1, HIDDEN), dtype=jnp.float32)
    w2 = xavier_normal(ks[2], HIDDEN, HIDDEN)
    b2 = jax.random.uniform(ks[3], (1, HIDDEN), dtype=jnp.float32)
    w3 = xavier_normal(ks[4], HIDDEN, output_n)
    b3 = jax.random.uniform(ks[5], (1, output_n), dtype=jnp.float32)
    return (w1, b1, w2, b2, w3, b3)


def mlp_reference_bf16(x, params):
    """Reference with the same bf16-operand / f32-accumulate recipe as the kernel."""
    w1, b1, w2, b2, w3, b3 = params
    xb = x.astype(jnp.bfloat16)
    h1 = jnp.maximum(
        jnp.dot(xb, w1.astype(jnp.bfloat16), preferred_element_type=jnp.float32) + b1, 0.0)
    h2 = jnp.maximum(
        jnp.dot(h1.astype(jnp.bfloat16), w2.astype(jnp.bfloat16),
                preferred_element_type=jnp.float32) + b2, 0.0)
    return jnp.dot(h2.astype(jnp.bfloat16), w3.astype(jnp.bfloat16),
                   preferred_element_type=jnp.float32) + b3


def mlp_reference_f32(x, params):
    w1, b1, w2, b2, w3, b3 = params
    h1 = jnp.maximum(x @ w1 + b1, 0.0)
    h2 = jnp.maximum(h1 @ w2 + b2, 0.0)
    return h2 @ w3 + b3


if __name__ == "__main__":
    key = jax.random.PRNGKey(0)
    k_x, k_p = jax.random.split(key)

    # Small shapes; batch=20 with the default tile policy gives tb=16, grid=(2,),
    # exercising multi-tile streaming AND the ragged (partial) last tile.
    batch, input_n, output_n = 20, 16, 4
    x = jax.random.normal(k_x, (batch, input_n), dtype=jnp.float32)
    params = init_params(k_p, input_n, output_n)

    out = mlp_forward(x, params)
    out = jax.block_until_ready(out)
    assert out.shape == (batch, output_n)

    # Tight check vs. a reference that uses the same bf16/f32 recipe.
    ref_bf16 = mlp_reference_bf16(x, params)
    assert jnp.allclose(out, ref_bf16, atol=1e-3, rtol=1e-3)

    # Loose sanity check vs. the pure-f32 PyTorch-equivalent math.
    ref_f32 = mlp_reference_f32(x, params)
    assert jnp.allclose(out, ref_f32, atol=5e-2, rtol=5e-2)

    # TODO(synk): if this MLP is driven once per RNN timestep, fuse the timestep loop
    # into the kernel (time as a grid axis / in-kernel fori_loop with weights resident
    # in VMEM) instead of one pallas_call per step.

    print("KERNEL_OK")
</pallas_src>

<mosaic_0001>
module attributes {stable_mosaic.version = 11 : i64} {
  func.func @_mlp_kernel(%arg0: i32, %arg1: memref<16x16xf32, #tpu.memory_space<vmem>>, %arg2: memref<16x128xbf16, #tpu.memory_space<vmem>>, %arg3: memref<1x128xf32, #tpu.memory_space<vmem>>, %arg4: memref<128x128xbf16, #tpu.memory_space<vmem>>, %arg5: memref<1x128xf32, #tpu.memory_space<vmem>>, %arg6: memref<128x4xbf16, #tpu.memory_space<vmem>>, %arg7: memref<1x4xf32, #tpu.memory_space<vmem>>, %arg8: memref<16x4xf32, #tpu.memory_space<vmem>>) attributes {dimension_semantics = [#tpu.dimension_semantics<parallel>], iteration_bounds = array<i64: 2>, scalar_prefetch = 0 : i64, scratch_operands = 0 : i64, tpu.core_type = #tpu.core_type<tc>, window_params = [{transform_indices = @transform_0, window_bounds = array<i64: 16, 16>}, {pipeline_mode = #tpu.pipeline_mode<synchronous>, transform_indices = @transform_1, window_bounds = array<i64: 16, 128>}, {pipeline_mode = #tpu.pipeline_mode<synchronous>, transform_indices = @transform_2, window_bounds = array<i64: 1, 128>}, {pipeline_mode = #tpu.pipeline_mode<synchronous>, transform_indices = @transform_3, window_bounds = array<i64: 128, 128>}, {pipeline_mode = #tpu.pipeline_mode<synchronous>, transform_indices = @transform_4, window_bounds = array<i64: 1, 128>}, {pipeline_mode = #tpu.pipeline_mode<synchronous>, transform_indices = @transform_5, window_bounds = array<i64: 128, 4>}, {pipeline_mode = #tpu.pipeline_mode<synchronous>, transform_indices = @transform_6, window_bounds = array<i64: 1, 4>}, {transform_indices = @transform_7, window_bounds = array<i64: 16, 4>}]} {
    %c0 = arith.constant 0 : index
    %c0_0 = arith.constant 0 : index
    %0 = vector.load %arg1[%c0, %c0_0] : memref<16x16xf32, #tpu.memory_space<vmem>>, vector<16x16xf32>
    %1 = arith.truncf %0 : vector<16x16xf32> to vector<16x16xbf16>
    %c0_1 = arith.constant 0 : index
    %c0_2 = arith.constant 0 : index
    %2 = vector.load %arg2[%c0_1, %c0_2] : memref<16x128xbf16, #tpu.memory_space<vmem>>, vector<16x128xbf16>
    %cst = arith.constant dense<0.000000e+00> : vector<16x128xf32>
    %3 = tpu.matmul %1, %2, %cst {dimension_numbers = #tpu.dot_dimension_numbers<[1], [0], [0], [1], [0, 0, 1, 1], [], []>} : vector<16x16xbf16>, vector<16x128xbf16>, vector<16x128xf32> -> vector<16x128xf32>
    %c0_3 = arith.constant 0 : index
    %c0_4 = arith.constant 0 : index
    %4 = vector.load %arg3[%c0_3, %c0_4] : memref<1x128xf32, #tpu.memory_space<vmem>>, vector<1x128xf32>
    %5 = vector.broadcast %4 : vector<1x128xf32> to vector<16x128xf32>
    %6 = arith.addf %3, %5 : vector<16x128xf32>
    %cst_5 = arith.constant 0.000000e+00 : f32
    %7 = vector.broadcast %cst_5 : f32 to vector<16x128xf32>
    %8 = arith.maximumf %6, %7 : vector<16x128xf32>
    %9 = arith.truncf %8 : vector<16x128xf32> to vector<16x128xbf16>
    %c0_6 = arith.constant 0 : index
    %c0_7 = arith.constant 0 : index
    %10 = vector.load %arg4[%c0_6, %c0_7] : memref<128x128xbf16, #tpu.memory_space<vmem>>, vector<128x128xbf16>
    %cst_8 = arith.constant dense<0.000000e+00> : vector<16x128xf32>
    %11 = tpu.matmul %9, %10, %cst_8 {dimension_numbers = #tpu.dot_dimension_numbers<[1], [0], [0], [1], [0, 0, 1, 1], [], []>} : vector<16x128xbf16>, vector<128x128xbf16>, vector<16x128xf32> -> vector<16x128xf32>
    %c0_9 = arith.constant 0 : index
    %c0_10 = arith.constant 0 : index
    %12 = vector.load %arg5[%c0_9, %c0_10] : memref<1x128xf32, #tpu.memory_space<vmem>>, vector<1x128xf32>
    %13 = vector.broadcast %12 : vector<1x128xf32> to vector<16x128xf32>
    %14 = arith.addf %11, %13 : vector<16x128xf32>
    %cst_11 = arith.constant 0.000000e+00 : f32
    %15 = vector.broadcast %cst_11 : f32 to vector<16x128xf32>
    %16 = arith.maximumf %14, %15 : vector<16x128xf32>
    %17 = arith.truncf %16 : vector<16x128xf32> to vector<16x128xbf16>
    %c0_12 = arith.constant 0 : index
    %c0_13 = arith.constant 0 : index
    %18 = vector.load %arg6[%c0_12, %c0_13] : memref<128x4xbf16, #tpu.memory_space<vmem>>, vector<128x4xbf16>
    %cst_14 = arith.constant dense<0.000000e+00> : vector<16x4xf32>
    %19 = tpu.matmul %17, %18, %cst_14 {dimension_numbers = #tpu.dot_dimension_numbers<[1], [0], [0], [1], [0, 0, 1, 1], [], []>} : vector<16x128xbf16>, vector<128x4xbf16>, vector<16x4xf32> -> vector<16x4xf32>
    %c0_15 = arith.constant 0 : index
    %c0_16 = arith.constant 0 : index
    %20 = vector.load %arg7[%c0_15, %c0_16] : memref<1x4xf32, #tpu.memory_space<vmem>>, vector<1x4xf32>
    %21 = vector.broadcast %20 : vector<1x4xf32> to vector<16x4xf32>
    %22 = arith.addf %19, %21 : vector<16x4xf32>
    %c0_17 = arith.constant 0 : index
    %c0_18 = arith.constant 0 : index
    %23 = vector.load %arg8[%c0_17, %c0_18] : memref<16x4xf32, #tpu.memory_space<vmem>>, vector<16x4xf32>
    tpu.vector_store %arg8[%c0_17, %c0_18], %22 {strides = array<i32>} : memref<16x4xf32, #tpu.memory_space<vmem>>, vector<16x4xf32>,
    return
  }
  func.func @transform_0(%arg0: i32) -> (i32, i32) {
    %c0_i32 = arith.constant 0 : i32
    %c0_i32_0 = arith.constant 0 : i32
    return %arg0, %c0_i32 : i32, i32
  }
  func.func @transform_1(%arg0: i32) -> (i32, i32) {
    %c0_i32 = arith.constant 0 : i32
    %c0_i32_0 = arith.constant 0 : i32
    %c0_i32_1 = arith.constant 0 : i32
    return %c0_i32, %c0_i32_0 : i32, i32
  }
  func.func @transform_2(%arg0: i32) -> (i32, i32) {
    %c0_i32 = arith.constant 0 : i32
    %c0_i32_0 = arith.constant 0 : i32
    %c0_i32_1 = arith.constant 0 : i32
    return %c0_i32, %c0_i32_0 : i32, i32
  }
  func.func @transform_3(%arg0: i32) -> (i32, i32) {
    %c0_i32 = arith.constant 0 : i32
    %c0_i32_0 = arith.constant 0 : i32
    %c0_i32_1 = arith.constant 0 : i32
    return %c0_i32, %c0_i32_0 : i32, i32
  }
  func.func @transform_4(%arg0: i32) -> (i32, i32) {
    %c0_i32 = arith.constant 0 : i32
    %c0_i32_0 = arith.constant 0 : i32
    %c0_i32_1 = arith.constant 0 : i32
    return %c0_i32, %c0_i32_0 : i32, i32
  }
  func.func @transform_5(%arg0: i32) -> (i32, i32) {
    %c0_i32 = arith.constant 0 : i32
    %c0_i32_0 = arith.constant 0 : i32
    %c0_i32_1 = arith.constant 0 : i32
    return %c0_i32, %c0_i32_0 : i32, i32
  }
  func.func @transform_6(%arg0: i32) -> (i32, i32) {
    %c0_i32 = arith.constant 0 : i32
    %c0_i32_0 = arith.constant 0 : i32
    %c0_i32_1 = arith.constant 0 : i32
    return %c0_i32, %c0_i32_0 : i32, i32
  }
  func.func @transform_7(%arg0: i32) -> (i32, i32) {
    %c0_i32 = arith.constant 0 : i32
    %c0_i32_0 = arith.constant 0 : i32
    return %arg0, %c0_i32 : i32, i32
  }
}

</mosaic_0001>

<bundles_post_ra>
// kernel: tpu_custom_call.1
= control target key start
LH: loop header
LB: loop body
LE: loop exit
PB: predicated region body
PF: predicated region fallthrough
CT: control target
= control target key end

     0   :  { %s1059_s24 = smov 0   ;;  %s1061_s25 = smov 0   ;;  %s1202_s0 = inlined_call_operand.vmem [shape: f32[20,16], index: 0, kind: input, shape index: {}]   ;;  %s1203_s1 = inlined_call_operand.vmem [shape: bf16[16,128], index: 1, kind: input, shape index: {}]   ;;  %s1204_s2 = inlined_call_operand.vmem [shape: f32[1,128], index: 2, kind: input, shape index: {}]   ;;  %s1205_s3 = inlined_call_operand.vmem [shape: bf16[128,128], index: 3, kind: input, shape index: {}]   ;;  %s1206_s4 = inlined_call_operand.vmem [shape: f32[1,128], index: 4, kind: input, shape index: {}]   ;;  %s1207_s5 = inlined_call_operand.vmem [shape: bf16[128,4], index: 5, kind: input, shape index: {}]   ;;  %s1208_s6 = inlined_call_operand.vmem [shape: f32[1,4], index: 6, kind: input, shape index: {}]   ;;  %s1209_s7 = inlined_call_operand.vmem [shape: f32[20,4], index: 7, kind: output, shape index: {}]  }
   0x1   :  { %s1063_s26 = smov 0  }
   0x2 LB: > { %s1072_s27 = sadd.s32 4294967295, %s985_s26   ;;  %s1074_s28 = sadd.s32 1, %s985_s26   ;;  %s985_s26 = sphi %s1063_s26, %s1213_s26   ;;  %s981_s25 = sphi %s1061_s25, %s1212_s25   ;;  %s977_s24 = sphi %s1059_s24, %s1211_s24  }
   0x3   : > { %s173_s29 = ssub.s32 %s985_s26, %s1074_s28  ;;  %s176_s30 = sadd.s32 1, %s981_s25 }
   0x4   : > { %p174_p0 = scmp.eq.s32.totalorder %s173_s29, 0  ;;  %p186_p1 = scmp.ne.s32.totalorder %s981_s25, %s977_s24 }
   0x5   : > { %p187_p2 = scmp.eq.s32.totalorder %s1072_s27, 1  ;;  %p730_p3 = scmp.ge.s32.totalorder %s985_s26, 1 }
   0x6   : > { %s1082_s8 = scalar_select %p174_p0, %s981_s25, %s176_s30  }
   0x7   : > { %p1084_p4 = por %p187_p2, %p186_p1  ;;  %p246_p5 = scmp.lt.s32.totalorder %s985_s26, 3 }
   0x9   : > { %p247_p6 = pnand %p730_p3, %p246_p5 }
   0xa   : > { %s1092_s12 = sshll.u32 (!%p247_p6), %s1072_s27, 1  ;;  %s278_s22 = sand.u32 (!%p247_p6), 1, %s977_s24  }
   0xb   : > { %250 = sbr.rel (%p247_p6) target bundleno = 485 (0x1e5), region = 48  ;;  %p286_p7 = scmp.lt.s32.totalorder (!%p247_p6), %s1092_s12, 2 }
   0xc   : > { %s731_s23 = sshll.u32 (!%p247_p6), %s278_s22, 4 }
   0xd   : > { %s1157_s30 = scalar_lea.vmem (!%p247_p6), [#allocation2], %s731_s23  }
  0x10   : > { %v820_v0 = vld [vmem:[%s1203_s1] sm:$0xff]  ;;  %v828_v1 = vld [vmem:[%s1205_s3 + $0x38] sm:$0xff]  ;;  %v827_v2 = vld [vmem:[%s1205_s3 + $0x30] sm:$0xff]  ;;  %s287_s17 = scalar_select %p286_p7, %s1092_s12, 2  ;;  %vm316_vm0 = vcmask 130048   ;;  %vm504_vm1 = vcmask 31744  }
  0x11   : > { %327 = vmatpush.bf16.msra.mxu0 %v820_v0  ;;  %405 = vmatpush.bf16.msra.mxu1 %v828_v1  ;;  %v826_v3 = vld [vmem:[%s1205_s3 + $0x28] sm:$0xff]  ;;  %v825_v7 = vld [vmem:[%s1205_s3 + $0x20] sm:$0xff]  ;;  %v824_v8 = vld [vmem:[%s1205_s3 + $0x18] sm:$0xff]  ;;  %s515_s24 = ssub.s32 (%p1084_p4), 3, %s1092_s12  ;;  %s837_s10 = sshll.u32 (%p1084_p4), %s1072_s27, 4 }
  0x12   : > { %s733_s18 = sshll.u32 %s287_s17, 3  ;;  %v823_v9 = vld [vmem:[%s1205_s3 + $0x10] sm:$0xff]  ;;  %v822_v10 = vld [vmem:[%s1205_s3 + $0x8] sm:$0xff]  ;;  %v821_v11 = vld [vmem:[%s1205_s3] sm:$0xff]  ;;  %p516_p8 = scmp.lt.s32.totalorder (%p1084_p4), %s515_s24, 2 }
  0x13   : > { %s289_s21 = scalar_lea.vmem %s1202_s0, %s733_s18  ;;  %v836_v12 = vld [vmem:[%s1207_s5 + $0x38] sm:$0xff]  ;;  %v835_v13 = vld [vmem:[%s1207_s5 + $0x30] sm:$0xff]  ;;  %v834_v14 = vld [vmem:[%s1207_s5 + $0x28] sm:$0xff]  ;;  %s1168_s14 = scalar_lea.vmem (%p1084_p4), %s1209_s7, %s837_s10  }
  0x14   : > { %v301_v4 = vld [vmem:[%s289_s21] sm:$0xff]  ;;  %v302_v5 = vld [vmem:[%s289_s21 + $0x8] sm:$0xff]  ;;  %490 = vmatpush.bf16.msra.mxu2 %v836_v12  ;;  %v832_v24 = vld [vmem:[%s1207_s5 + $0x18] sm:$0xff] }
  0x15   : > { %406 = vmatpush.bf16.msra.mxu1 %v827_v2  ;;  %v303_v6 = vpack.c.bf16 %v302_v5, %v301_v4  ;;  %v833_v15 = vld [vmem:[%s1207_s5 + $0x20] sm:$0xff]  ;;  %v831_v25 = vld [vmem:[%s1207_s5 + $0x10] sm:$0xff]  ;;  %v830_v26 = vld [vmem:[%s1207_s5 + $0x8] sm:$0xff] }
  0x16   : > { %v928_v17 = vld [vmem:[%s1204_s2] ss:$0 sm:$0xff] }
  0x17   : > { %738 = vmatmul.msk.bf16.vlgmr.msra.gmra.mxu0 %vm316_vm0, %v303_v6  ;;  %v829_v27 = vld [vmem:[%s1207_s5] sm:$0xff] }
  0x18   : > { %491 = vmatpush.bf16.msra.mxu2 %v835_v13  ;;  %v929_v29 = vld [vmem:[%s1206_s4] ss:$0 sm:$0xff] }
  0x19   : > { %407 = vmatpush.bf16.msra.mxu1 %v826_v3  ;;  %v930_v36 = vld [vmem:[%s1208_s6] ss:$0 sm:$0xff] }
  0x1c   : > { %492 = vmatpush.bf16.msra.mxu2 %v834_v14 }
  0x1d   : > { %408 = vmatpush.bf16.msra.mxu1 %v825_v7 }
  0x20   : > { %493 = vmatpush.bf16.msra.mxu2 %v833_v15 }
  0x21   : > { %409 = vmatpush.bf16.msra.mxu1 %v824_v8 }
  0x24   : > { %494 = vmatpush.bf16.msra.mxu2 %v832_v24 }
  0x25   : > { %410 = vmatpush.bf16.msra.mxu1 %v823_v9 }
  0x28   : > { %495 = vmatpush.bf16.msra.mxu2 %v831_v25 }
  0x29   : > { %411 = vmatpush.bf16.msra.mxu1 %v822_v10 }
  0x2c   : > { %496 = vmatpush.bf16.msra.mxu2 %v830_v26 }
  0x2d   : > { %412 = vmatpush.bf16.msra.mxu1 %v821_v11 }
  0x30   : > { %497 = vmatpush.bf16.msra.mxu2 %v829_v27 }
  0x94   : > { %v329_v16 = vpop.f32.mrf.mxu0 }
  0x95   : > { %v330_v18 = vadd.f32 %v928_v17, %v329_v16 }
  0x97   : > { %v334_v21 = vmax.f32 %v330_v18, 0.0 }
  0x9c   : > { %v331_v19 = vpop.f32.mrf.mxu0 }
  0x9d   : > { %v332_v20 = vadd.f32 %v928_v17, %v331_v19 }
  0x9f   : > { %v335_v22 = vmax.f32 %v332_v20, 0.0 }
  0xa1   : > { %v336_v23 = vpack.c.bf16 %v335_v22, %v334_v21 }
  0xa3   : > { %413 = vmatmul.bf16.vlgmr.msra.gmra.mxu1 %v336_v23 }
 0x120   : > { %v414_v28 = vpop.f32.mrf.mxu1 }
 0x121   : > { %v415_v30 = vadd.f32 %v929_v29, %v414_v28 }
 0x123   : > { %v419_v33 = vmax.f32 %v415_v30, 0.0 }
 0x128   : > { %v416_v31 = vpop.f32.mrf.mxu1 }
 0x129   : > { %v417_v32 = vadd.f32 %v929_v29, %v416_v31 }
 0x12b   : > { %v420_v34 = vmax.f32 %v417_v32, 0.0 }
 0x12d   : > { %v421_v35 = vpack.c.bf16 %v420_v34, %v419_v33 }
 0x12f   : > { %498 = vmatmul.bf16.vlgmr.msra.gmra.mxu2 %v421_v35 }
 0x1b2   : > { %v499_v37 = vpop.f32.mrf.mxu2 }
 0x1b3   : > { %v500_v38 = vadd.f32 %v930_v36, %v499_v37 }
 0x1b5   : > { %505 = vst.msk [vmem:[%s1157_s30] sm:$0xff] %vm504_vm1, %v500_v38 }
 0x1b9   : > { %513 = sbr.rel (!%p1084_p4) target bundleno = 485 (0x1e5), region = 52 }
 0x1ba   : > { %v501_v39 = vpop.f32.mrf.mxu2 }
 0x1bb   : > { %v502_v40 = vadd.f32 %v930_v36, %v501_v39 }
 0x1bd   : > { %506 = vst.msk [vmem:[%s1157_s30 + $0x8] sm:$0xff] %vm504_vm1, %v502_v40 }
 0x1be   : > { %s1215_s24 = smov (!%p516_p8, %s515_s24), 2 }
 0x1bf   : > { %s805_s15 = sshll.u32 %s1215_s24, 3 }
 0x1c0   : > { %p808_p9 = scmp.eq.s32.totalorder %s805_s15, 0 }
 0x1c1   : > { %s1174_s16 = sshrl.u32 (!%p808_p9), %s1215_s24, 1 }
 0x1c2   : > { %524 = sbr.rel (%p808_p9) target bundleno = 485 (0x1e5), region = 56  ;;  %p809_p10 = scmp.le.s32.totalorder (!%p808_p9), %s1174_s16, 0 }
 0x1c7   : > { %683 = sbr.rel (%p809_p10) target bundleno = 468 (0x1d4), region = 132  ;;  %s987_s27 = smov (!%p809_p10), %s1168_s14  }
 0x1c8   : > { %s991_s9 = smov (!%p809_p10), %s1157_s30   ;;  %s995_s12 = smov (!%p809_p10), 0  }
 0x1c9   : > { %s999_s17 = smov (!%p809_p10), 0  }
 0x1cc LB: >> { %v589_v41 = vld [vmem:[%s993_s9] sm:$0xff]  ;;  %v591_v42 = vld [vmem:[%s993_s9 + $0x8] sm:$0xff]  ;;  %s593_s18 = sadd.s32 1, %s997_s12  ;;  %s583_s17 = sadd.s32 1, %s1001_s17   ;;  %s1001_s17 = sphi %s999_s17, %s583_s17   ;;  %s997_s12 = sphi %s995_s12, %s996_s12   ;;  %s993_s9 = sphi %s991_s9, %s598_s9   ;;  %s989_s27 = sphi %s987_s27, %s599_s27  }
 0x1cd   : >> { %590 = vst [vmem:[%s989_s27] sm:$0xff] %v589_v41  ;;  %p594_p11 = scmp.ge.s32.totalorder %s593_s18, %s1174_s16  ;;  %p582_p12 = scmp.ge.s32.totalorder %s583_s17, %s1174_s16 }
 0x1ce   : >> { %592 = vst [vmem:[%s989_s27 + $0x8] sm:$0xff] %v591_v42 }
 0x1cf   : >> { %s1217_s18 = smov (%p594_p11, %s593_s18), 0  ;;  %585 = sbr.rel (!%p582_p12) target bundleno = 460 (0x1cc), region = 138 }
 0x1d0   : >> { %s810_s19 = sshll.u32 %s1217_s18, 4  ;;  %s996_s12 = smov %s1217_s18  }
 0x1d1   : >> { %s598_s9 = scalar_lea.vmem %s1157_s30, %s810_s19 [#allocation2]   ;;  %s599_s27 = scalar_lea.vmem %s1168_s14, %s810_s19  }
 0x1d4 PF: > { %s1184_s20 = sand.u32 1, %s1215_s24   ;;  %s838_s21 = sshll.u32 %s1174_s16, 4 }
 0x1d5   : > { %s604_s22 = scalar_lea.vmem %s1157_s30, %s838_s21 [#allocation2]   ;;  %s606_s23 = scalar_lea.vmem %s1168_s14, %s838_s21  }
 0x1d6   : > { %p815_p13 = scmp.le.s32.totalorder %s1184_s20, 0 }
 0x1d7   : > { %s1003_s26 = smov (!%p815_p13), %s606_s23   ;;  %s1007_s29 = smov (!%p815_p13), %s604_s22  }
 0x1d8   : > { %697 = sbr.rel (%p815_p13) target bundleno = 485 (0x1e5), region = 143  ;;  %s1011_s10 = smov (!%p815_p13), 0  }
 0x1d9   : > { %s1015_s11 = smov (!%p815_p13), 0  }
 0x1dd LB: >> { %v616_v43 = vld [vmem:[%s1009_s29] sm:$0xff]  ;;  %s618_s24 = sadd.s32 1, %s1013_s10  ;;  %s610_s11 = sadd.s32 1, %s1017_s11   ;;  %s1017_s11 = sphi %s1015_s11, %s610_s11   ;;  %s1013_s10 = sphi %s1011_s10, %s1012_s10   ;;  %s1009_s29 = sphi %s1007_s29, %s623_s29   ;;  %s1005_s26 = sphi %s1003_s26, %s624_s26  }
 0x1de   : >> { %617 = vst [vmem:[%s1005_s26] sm:$0xff] %v616_v43  ;;  %p619_p0 = scmp.ge.s32.totalorder %s618_s24, %s1184_s20  ;;  %p609_p1 = scmp.ge.s32.totalorder %s610_s11, %s1184_s20 }
 0x1e0   : >> { %s1219_s24 = smov (%p619_p0, %s618_s24), 0  ;;  %612 = sbr.rel (!%p609_p1) target bundleno = 477 (0x1dd), region = 149 }
 0x1e1   : >> { %s816_s30 = sshll.u32 %s1219_s24, 3  ;;  %s1012_s10 = smov %s1219_s24  }
 0x1e2   : >> { %s623_s29 = scalar_lea.vmem %s604_s22, %s816_s30 [#allocation2]   ;;  %s624_s26 = scalar_lea.vmem %s606_s23, %s816_s30  }
 0x1e5 PF: > { %p14_p2 = scmp.ge.s32.totalorder %s1074_s28, 4   ;;  %s1211_s24 = smov %s981_s25 }
 0x1e6   : > { %s1212_s25 = smov %s1082_s8  ;;  %s1213_s26 = smov %s1074_s28 }
 0x1e7   :  { %16 = sbr.rel (!%p14_p2) target bundleno = 2 (0x2), region = 160 }

</bundles_post_ra>
